<compile_context>
chip_gen: v7x
topology: tpu7x:2x2x1
jax: 0.10.0
libtpu: 0.0.40
codegen_flags: <defaults>
</compile_context>

<pallas_src>
import functools

import jax
import jax.numpy as jnp
from jax.experimental import pallas as pl
from jax.experimental.pallas import tpu as pltpu


def _linear_silu_kernel(x_ref, w_ref, o_ref, acc_ref, *, tk):
    # grid = (Mp//tm, Np//tn, Kp//tk); K is the innermost (reduction) axis.
    k = pl.program_id(2)

    @pl.when(k == 0)
    def _():
        acc_ref[...] = jnp.zeros_like(acc_ref)

    if x_ref.shape[1] == tk:
        # x is tiled along K by the BlockSpec.
        x_tile = x_ref[...]
    else:
        # x is a resident (tm, Kp) strip; slice the current K chunk in VMEM.
        start = pl.multiple_of(k * tk, tk)
        x_tile = x_ref[:, pl.ds(start, tk)]

    # bf16 x bf16 -> f32 accumulate on the MXU.
    acc_ref[...] += jnp.dot(x_tile, w_ref[...], preferred_element_type=jnp.float32)

    @pl.when(k == pl.num_programs(2) - 1)
    def _():
        acc = acc_ref[...]
        # SiLU: x * sigmoid(x) = x / (1 + exp(-x)); exp and approx recip -> EUP.
        e = jnp.exp(-acc)
        o_ref[...] = (acc * pl.reciprocal(1.0 + e, approx=True)).astype(o_ref.dtype)


def _round_up(x, m):
    return ((x + m - 1) // m) * m


def _pick_tile(dim, preferred):
    """(tile, padded_dim): largest tile <= preferred dividing the lane-padded dim."""
    padded = _round_up(dim, 128) if dim >= 128 else dim
    for cand in (preferred, 1024, 512, 256, 128):
        if cand <= padded and padded % cand == 0:
            return cand, padded
    return padded, padded


def _pick_tm(M):
    """(tm, Mp): row tile chosen from the padded-to-8 M to avoid padding waste."""
    m8 = _round_up(M, 8)
    if m8 <= 1024:
        return m8, m8                      # single row-block, minimal padding
    for cand in (1024, 512, 256, 128):
        if m8 % cand == 0:
            return cand, m8
    return 512, _round_up(m8, 512)         # general fallback; wrapper pads M up


# Per-pipeline-buffer cap (bytes, bf16) for keeping the whole (tm, K) x strip resident.
_X_STRIP_MAX_BYTES = 8 * 1024 * 1024


@jax.jit
def linear_silu(x, weight):
    """y = silu(x @ weight.T)

    x:      (..., K)   activations
    weight: (N, K)     PyTorch nn.Linear weight layout (out_features, in_features)
    """
    *lead, K = x.shape
    N, Kw = weight.shape
    assert Kw == K

    x2d = x.reshape(-1, K)
    M = x2d.shape[0]

    # ---- shape-adaptive tile selection (all concrete at trace time) ----
    tm, Mp = _pick_tm(M)
    tn, Np = _pick_tile(N, 1024)
    tk, Kp = _pick_tile(K, 512)

    # One-time operand prep (the weight is a static parameter in the module):
    # bf16 halves HBM bytes and runs the MXU at native rate; (K, N) layout gives
    # the canonical contraction so no per-tile transpose is generated.
    x_bf = x2d.astype(jnp.bfloat16)
    w_bf = weight.T.astype(jnp.bfloat16)

    if Mp != M or Kp != K:
        x_bf = jnp.pad(x_bf, ((0, Mp - M), (0, Kp - K)))
    if Kp != K or Np != N:
        w_bf = jnp.pad(w_bf, ((0, Kp - K), (0, Np - N)))

    grid = (Mp // tm, Np // tn, Kp // tk)

    x_strip_resident = tm * Kp * 2 <= _X_STRIP_MAX_BYTES
    if x_strip_resident:
        # Block index depends only on i -> x is read from HBM exactly once per
        # row-block, independent of the j (N) loop.
        x_spec = pl.BlockSpec((tm, Kp), lambda i, j, k: (i, 0))
    else:
        x_spec = pl.BlockSpec((tm, tk), lambda i, j, k: (i, k))

    out = pl.pallas_call(
        functools.partial(_linear_silu_kernel, tk=tk),
        out_shape=jax.ShapeDtypeStruct((Mp, Np), x.dtype),
        grid_spec=pltpu.PrefetchScalarGridSpec(
            num_scalar_prefetch=0,
            grid=grid,
            in_specs=[
                x_spec,                                           # x (bf16)
                pl.BlockSpec((tk, tn), lambda i, j, k: (k, j)),   # weight (K, N) bf16
            ],
            out_specs=pl.BlockSpec((tm, tn), lambda i, j, k: (i, j)),
            scratch_shapes=[pltpu.VMEM((tm, tn), jnp.float32)],
        ),
        compiler_params=pltpu.CompilerParams(
            dimension_semantics=("parallel", "parallel", "arbitrary"),
            # Worst-case working set (tm=1024, tn=1024, tk=512, resident bf16
            # x strip at K=4096) is ~30 MiB double-buffered: 48 MiB keeps
            # headroom under v7x's 64 MiB physical VMEM while lifting v5e's
            # 16 MiB scoped default.
            vmem_limit_bytes=48 * 1024 * 1024,
        ),
    )(x_bf, w_bf)

    if Mp != M or Np != N:
        out = out[:M, :N]
    return out.reshape(*lead, N)


def _reference(x, weight):
    # Same bf16 operand quantization as the kernel, f32 accumulation / epilogue.
    xq = x.astype(jnp.bfloat16).astype(jnp.float32)
    wq = weight.astype(jnp.bfloat16).astype(jnp.float32)
    y = jnp.einsum("...k,nk->...n", xq, wq)
    return (y * jax.nn.sigmoid(y)).astype(x.dtype)


if __name__ == "__main__":
    # Small shapes consistent with the module's forward (module uses hidden=4096;
    # scaled down for the smoke test, K == N as in Linear(4096, 4096)).
    batch, seq, hidden = 2, 8, 512
    key = jax.random.PRNGKey(0)
    kx, kw = jax.random.split(key)

    x = jax.random.normal(kx, (batch, seq, hidden), dtype=jnp.float32)
    # Deterministic synthetic weight, PyTorch layout (out_features, in_features).
    weight = jax.random.normal(kw, (hidden, hidden), dtype=jnp.float32) * (
        1.0 / jnp.sqrt(hidden)
    )

    y = jax.block_until_ready(linear_silu(x, weight))
    y_ref = _reference(x, weight)

    assert y.shape == (batch, seq, hidden)
    assert jnp.allclose(y, y_ref, atol=2e-2, rtol=2e-2), "mismatch vs reference"

    print("KERNEL_OK")
</pallas_src>

<mosaic_0001>
module attributes {stable_mosaic.version = 11 : i64} {
  func.func @_linear_silu_kernel(%arg0: i32, %arg1: i32, %arg2: i32, %arg3: memref<16x512xbf16, #tpu.memory_space<vmem>>, %arg4: memref<512x512xbf16, #tpu.memory_space<vmem>>, %arg5: memref<16x512xf32, #tpu.memory_space<vmem>>, %arg6: memref<16x512xf32, #tpu.memory_space<vmem>>) attributes {dimension_semantics = [#tpu.dimension_semantics<parallel>, #tpu.dimension_semantics<parallel>, #tpu.dimension_semantics<arbitrary>], iteration_bounds = array<i64: 1, 1, 1>, scalar_prefetch = 0 : i64, scratch_operands = 1 : i64, tpu.core_type = #tpu.core_type<tc>, window_params = [{transform_indices = @transform_0, window_bounds = array<i64: 16, 512>}, {transform_indices = @transform_1, window_bounds = array<i64: 512, 512>}, {transform_indices = @transform_2, window_bounds = array<i64: 16, 512>}]} {
    %c0_i32 = arith.constant 0 : i32
    %0 = arith.cmpi eq, %arg2, %c0_i32 : i32
    %1 = arith.extui %0 : i1 to i32
    %c0_i32_0 = arith.constant 0 : i32
    %2 = arith.cmpi ne, %1, %c0_i32_0 : i32
    scf.if %2 {
      %cst_10 = arith.constant 0.000000e+00 : f32
      %12 = vector.broadcast %cst_10 : f32 to vector<16x512xf32>
      %c0_11 = arith.constant 0 : index
      %c0_12 = arith.constant 0 : index
      %13 = vector.load %arg6[%c0_11, %c0_12] : memref<16x512xf32, #tpu.memory_space<vmem>>, vector<16x512xf32>
      tpu.vector_store %arg6[%c0_11, %c0_12], %12 {strides = array<i32>} : memref<16x512xf32, #tpu.memory_space<vmem>>, vector<16x512xf32>,
    } else {
    }
    %c0 = arith.constant 0 : index
    %c0_1 = arith.constant 0 : index
    %3 = vector.load %arg3[%c0, %c0_1] : memref<16x512xbf16, #tpu.memory_space<vmem>>, vector<16x512xbf16>
    %c0_2 = arith.constant 0 : index
    %c0_3 = arith.constant 0 : index
    %4 = vector.load %arg6[%c0_2, %c0_3] : memref<16x512xf32, #tpu.memory_space<vmem>>, vector<16x512xf32>
    %c0_4 = arith.constant 0 : index
    %c0_5 = arith.constant 0 : index
    %5 = vector.load %arg4[%c0_4, %c0_5] : memref<512x512xbf16, #tpu.memory_space<vmem>>, vector<512x512xbf16>
    %cst = arith.constant dense<0.000000e+00> : vector<16x512xf32>
    %6 = tpu.matmul %3, %5, %cst {dimension_numbers = #tpu.dot_dimension_numbers<[1], [0], [0], [1], [0, 0, 1, 1], [], []>} : vector<16x512xbf16>, vector<512x512xbf16>, vector<16x512xf32> -> vector<16x512xf32>
    %7 = arith.addf %4, %6 : vector<16x512xf32>
    %c0_6 = arith.constant 0 : index
    %c0_7 = arith.constant 0 : index
    %8 = vector.load %arg6[%c0_6, %c0_7] : memref<16x512xf32, #tpu.memory_space<vmem>>, vector<16x512xf32>
    tpu.vector_store %arg6[%c0_6, %c0_7], %7 {strides = array<i32>} : memref<16x512xf32, #tpu.memory_space<vmem>>, vector<16x512xf32>,
    %c0_i32_8 = arith.constant 0 : i32
    %9 = arith.cmpi eq, %arg2, %c0_i32_8 : i32
    %10 = arith.extui %9 : i1 to i32
    %c0_i32_9 = arith.constant 0 : i32
    %11 = arith.cmpi ne, %10, %c0_i32_9 : i32
    scf.if %11 {
      %c0_10 = arith.constant 0 : index
      %c0_11 = arith.constant 0 : index
      %12 = vector.load %arg6[%c0_10, %c0_11] : memref<16x512xf32, #tpu.memory_space<vmem>>, vector<16x512xf32>
      %cst_12 = arith.constant 0.000000e+00 : f32
      %13 = vector.broadcast %cst_12 : f32 to vector<16x512xf32>
      %14 = arith.subf %13, %12 : vector<16x512xf32>
      %15 = math.exp %14 : vector<16x512xf32>
      %cst_13 = arith.constant 1.000000e+00 : f32
      %16 = vector.broadcast %cst_13 : f32 to vector<16x512xf32>
      %17 = arith.addf %16, %15 : vector<16x512xf32>
      %18 = tpu.reciprocal %17 {approx = true} : vector<16x512xf32> -> vector<16x512xf32>
      %19 = arith.mulf %12, %18 : vector<16x512xf32>
      %c0_14 = arith.constant 0 : index
      %c0_15 = arith.constant 0 : index
      %20 = vector.load %arg5[%c0_14, %c0_15] : memref<16x512xf32, #tpu.memory_space<vmem>>, vector<16x512xf32>
      tpu.vector_store %arg5[%c0_14, %c0_15], %19 {strides = array<i32>} : memref<16x512xf32, #tpu.memory_space<vmem>>, vector<16x512xf32>,
    } else {
    }
    return
  }
  func.func @transform_0(%arg0: i32, %arg1: i32, %arg2: i32) -> (i32, i32) {
    %c0_i32 = arith.constant 0 : i32
    %c0_i32_0 = arith.constant 0 : i32
    return %arg0, %c0_i32 : i32, i32
  }
  func.func @transform_1(%arg0: i32, %arg1: i32, %arg2: i32) -> (i32, i32) {
    %c0_i32 = arith.constant 0 : i32
    return %arg2, %arg1 : i32, i32
  }
  func.func @transform_2(%arg0: i32, %arg1: i32, %arg2: i32) -> (i32, i32) {
    %c0_i32 = arith.constant 0 : i32
    return %arg0, %arg1 : i32, i32
  }
}

</mosaic_0001>

<bundles_post_ra>
// kernel: linear_silu.1
= control target key start
LH: loop header
LB: loop body
LE: loop exit
PB: predicated region body
PF: predicated region fallthrough
CT: control target
= control target key end

     0   :  { %s1930_s0 = inlined_call_operand.vmem [shape: bf16[16,512], index: 0, kind: input, shape index: {}]   ;;  %s1931_s1 = inlined_call_operand.vmem [shape: bf16[512,512], index: 1, kind: input, shape index: {}]   ;;  %s1932_s2 = inlined_call_operand.hbm [shape: f32[16,512], index: 2, kind: output, shape index: {}]  }
   0x1   :  { %v1238_v0 = vld [vmem:[%s1931_s1 + $0x4] ss:$16 sps:$4 sm:$0xff]   ;;  %v1240_v1 = vld [vmem:[%s1931_s1 + $0xc] ss:$16 sps:$4 sm:$0xff]   ;;  %v1242_v2 = vld [vmem:[%s1931_s1] ss:$16 sps:$4 sm:$0xff]  }
   0x2   :  { %824 = vmatprep.subr.bf16.mxu0 %v1238_v0  ;;  %v1243_v3 = vld [vmem:[%s1931_s1 + $0x8] ss:$16 sps:$4 sm:$0xff]   ;;  %910 = vmatprep.subr.bf16.mxu1 %v1240_v1  ;;  %v1244_v4 = vld [vmem:[%s1931_s1 + $0x24] ss:$16 sps:$4 sm:$0xff]   ;;  %v1246_v5 = vld [vmem:[%s1931_s1 + $0x2c] ss:$16 sps:$4 sm:$0xff]  }
   0x3   :  { %825 = vmatpush1.bf16.msra.mxu0 %v1242_v2  ;;  %911 = vmatpush1.bf16.msra.mxu1 %v1243_v3  ;;  %v1248_v6 = vld [vmem:[%s1931_s1 + $0x20] ss:$16 sps:$4 sm:$0xff]   ;;  %v1249_v7 = vld [vmem:[%s1931_s1 + $0x28] ss:$16 sps:$4 sm:$0xff]   ;;  %v1250_v8 = vld [vmem:[%s1931_s1 + $0x44] ss:$16 sps:$4 sm:$0xff]  }
   0x4   :  { %826 = vmatprep.subr.bf16.mxu0 %v1244_v4  ;;  %912 = vmatprep.subr.bf16.mxu1 %v1246_v5  ;;  %v1252_v9 = vld [vmem:[%s1931_s1 + $0x4c] ss:$16 sps:$4 sm:$0xff]   ;;  %v1254_v10 = vld [vmem:[%s1931_s1 + $0x40] ss:$16 sps:$4 sm:$0xff]   ;;  %v1255_v11 = vld [vmem:[%s1931_s1 + $0x48] ss:$16 sps:$4 sm:$0xff]  }
   0x5   :  { %v1256_v12 = vld [vmem:[%s1931_s1 + $0x64] ss:$16 sps:$4 sm:$0xff]   ;;  %v1258_v13 = vld [vmem:[%s1931_s1 + $0x6c] ss:$16 sps:$4 sm:$0xff]   ;;  %v1260_v14 = vld [vmem:[%s1931_s1 + $0x60] ss:$16 sps:$4 sm:$0xff]  }
   0x6   :  { %v1261_v15 = vld [vmem:[%s1931_s1 + $0x68] ss:$16 sps:$4 sm:$0xff]   ;;  %v1262_v16 = vld [vmem:[%s1931_s1 + $0x84] ss:$16 sps:$4 sm:$0xff]   ;;  %v1264_v17 = vld [vmem:[%s1931_s1 + $0x8c] ss:$16 sps:$4 sm:$0xff]  }
   0x7   :  { %827 = vmatpush1.bf16.msra.mxu0 %v1248_v6  ;;  %913 = vmatpush1.bf16.msra.mxu1 %v1249_v7  ;;  %v1266_v18 = vld [vmem:[%s1931_s1 + $0x80] ss:$16 sps:$4 sm:$0xff]   ;;  %v1267_v19 = vld [vmem:[%s1931_s1 + $0x88] ss:$16 sps:$4 sm:$0xff]   ;;  %v1268_v20 = vld [vmem:[%s1931_s1 + $0xa4] ss:$16 sps:$4 sm:$0xff]  }
   0x8   :  { %828 = vmatprep.subr.bf16.mxu0 %v1250_v8  ;;  %914 = vmatprep.subr.bf16.mxu1 %v1252_v9  ;;  %v1270_v21 = vld [vmem:[%s1931_s1 + $0xac] ss:$16 sps:$4 sm:$0xff]   ;;  %v1272_v22 = vld [vmem:[%s1931_s1 + $0xa0] ss:$16 sps:$4 sm:$0xff]   ;;  %v1273_v23 = vld [vmem:[%s1931_s1 + $0xa8] ss:$16 sps:$4 sm:$0xff]  }
   0x9   :  { %v1274_v24 = vld [vmem:[%s1931_s1 + $0xc4] ss:$16 sps:$4 sm:$0xff]   ;;  %v1276_v25 = vld [vmem:[%s1931_s1 + $0xcc] ss:$16 sps:$4 sm:$0xff]   ;;  %v1278_v26 = vld [vmem:[%s1931_s1 + $0xc0] ss:$16 sps:$4 sm:$0xff]  }
   0xa   :  { %v1279_v27 = vld [vmem:[%s1931_s1 + $0xc8] ss:$16 sps:$4 sm:$0xff]   ;;  %v1280_v28 = vld [vmem:[%s1931_s1 + $0xe4] ss:$16 sps:$4 sm:$0xff]   ;;  %v1282_v29 = vld [vmem:[%s1931_s1 + $0xec] ss:$16 sps:$4 sm:$0xff]  }
   0xb   :  { %829 = vmatpush1.bf16.msra.mxu0 %v1254_v10  ;;  %915 = vmatpush1.bf16.msra.mxu1 %v1255_v11  ;;  %v1284_v30 = vld [vmem:[%s1931_s1 + $0xe0] ss:$16 sps:$4 sm:$0xff]   ;;  %v1285_v31 = vld [vmem:[%s1931_s1 + $0xe8] ss:$16 sps:$4 sm:$0xff]   ;;  %v1286_v32 = vld [vmem:[%s1931_s1 + $0x104] ss:$16 sps:$4 sm:$0xff]  }
   0xc   :  { %830 = vmatprep.subr.bf16.mxu0 %v1256_v12  ;;  %916 = vmatprep.subr.bf16.mxu1 %v1258_v13  ;;  %v1288_v33 = vld [vmem:[%s1931_s1 + $0x10c] ss:$16 sps:$4 sm:$0xff]   ;;  %v1290_v34 = vld [vmem:[%s1931_s1 + $0x100] ss:$16 sps:$4 sm:$0xff]   ;;  %v1291_v35 = vld [vmem:[%s1931_s1 + $0x108] ss:$16 sps:$4 sm:$0xff]  }
   0xd   :  { %v1292_v36 = vld [vmem:[%s1931_s1 + $0x124] ss:$16 sps:$4 sm:$0xff]   ;;  %v1294_v37 = vld [vmem:[%s1931_s1 + $0x12c] ss:$16 sps:$4 sm:$0xff]   ;;  %v1296_v38 = vld [vmem:[%s1931_s1 + $0x120] ss:$16 sps:$4 sm:$0xff]  }
   0xe   :  { %v1297_v39 = vld [vmem:[%s1931_s1 + $0x128] ss:$16 sps:$4 sm:$0xff]   ;;  %v1298_v40 = vld [vmem:[%s1931_s1 + $0x144] ss:$16 sps:$4 sm:$0xff]   ;;  %v1300_v41 = vld [vmem:[%s1931_s1 + $0x14c] ss:$16 sps:$4 sm:$0xff]  }
   0xf   :  { %831 = vmatpush1.bf16.msra.mxu0 %v1260_v14  ;;  %917 = vmatpush1.bf16.msra.mxu1 %v1261_v15  ;;  %v1302_v42 = vld [vmem:[%s1931_s1 + $0x140] ss:$16 sps:$4 sm:$0xff]   ;;  %v1303_v43 = vld [vmem:[%s1931_s1 + $0x148] ss:$16 sps:$4 sm:$0xff]   ;;  %v1304_v44 = vld [vmem:[%s1931_s1 + $0x164] ss:$16 sps:$4 sm:$0xff]  }
  0x10   :  { %832 = vmatprep.subr.bf16.mxu0 %v1262_v16  ;;  %918 = vmatprep.subr.bf16.mxu1 %v1264_v17  ;;  %v1306_v45 = vld [vmem:[%s1931_s1 + $0x16c] ss:$16 sps:$4 sm:$0xff]   ;;  %v1308_v46 = vld [vmem:[%s1931_s1 + $0x160] ss:$16 sps:$4 sm:$0xff]   ;;  %v1309_v47 = vld [vmem:[%s1931_s1 + $0x168] ss:$16 sps:$4 sm:$0xff]  }
  0x11   :  { %v1336_v48 = vld [vmem:[%s1930_s0 + $0x4] ss:$16 sps:$4 sm:$0xff]   ;;  %v1312_v50 = vld [vmem:[%s1931_s1 + $0x18c] ss:$16 sps:$4 sm:$0xff]   ;;  %v1314_v51 = vld [vmem:[%s1931_s1 + $0x180] ss:$16 sps:$4 sm:$0xff]  }
  0x12   :  { %v1310_v49 = vld [vmem:[%s1931_s1 + $0x184] ss:$16 sps:$4 sm:$0xff]   ;;  %856 = vmatprep.mubr.bf16.mxu0 %v1336_v48  ;;  %942 = vmatprep.mubr.bf16.mxu1 %v1336_v48  ;;  %v1315_v52 = vld [vmem:[%s1931_s1 + $0x188] ss:$16 sps:$4 sm:$0xff]   ;;  %v1318_v54 = vld [vmem:[%s1931_s1 + $0x1ac] ss:$16 sps:$4 sm:$0xff]  }
  0x13   :  { %833 = vmatpush1.bf16.msra.mxu0 %v1266_v18  ;;  %919 = vmatpush1.bf16.msra.mxu1 %v1267_v19  ;;  %v1316_v53 = vld [vmem:[%s1931_s1 + $0x1a4] ss:$16 sps:$4 sm:$0xff]   ;;  %v1320_v55 = vld [vmem:[%s1931_s1 + $0x1a0] ss:$16 sps:$4 sm:$0xff]   ;;  %v1321_v56 = vld [vmem:[%s1931_s1 + $0x1a8] ss:$16 sps:$4 sm:$0xff]  }
  0x14   :  { %834 = vmatprep.subr.bf16.mxu0 %v1268_v20  ;;  %920 = vmatprep.subr.bf16.mxu1 %v1270_v21  ;;  %v1322_v57 = vld [vmem:[%s1931_s1 + $0x1c4] ss:$16 sps:$4 sm:$0xff]   ;;  %v1324_v58 = vld [vmem:[%s1931_s1 + $0x1cc] ss:$16 sps:$4 sm:$0xff]   ;;  %v1326_v59 = vld [vmem:[%s1931_s1 + $0x1c0] ss:$16 sps:$4 sm:$0xff]  }
  0x15   :  { %v1327_v60 = vld [vmem:[%s1931_s1 + $0x1c8] ss:$16 sps:$4 sm:$0xff]   ;;  %v1328_v61 = vld [vmem:[%s1931_s1 + $0x1e4] ss:$16 sps:$4 sm:$0xff]   ;;  %v1330_v62 = vld [vmem:[%s1931_s1 + $0x1ec] ss:$16 sps:$4 sm:$0xff]  }
  0x16   :  { %v1332_v63 = vld [vmem:[%s1931_s1 + $0x1e0] ss:$16 sps:$4 sm:$0xff]   ;;  %v1333_v0 = vld [vmem:[%s1931_s1 + $0x1e8] ss:$16 sps:$4 sm:$0xff]   ;;  %v1339_v1 = vld [vmem:[%s1931_s1 + $0x204] ss:$16 sps:$4 sm:$0xff]  }
  0x17   :  { %835 = vmatpush1.bf16.msra.mxu0 %v1272_v22  ;;  %921 = vmatpush1.bf16.msra.mxu1 %v1273_v23  ;;  %v1342_v2 = vld [vmem:[%s1931_s1 + $0x20c] ss:$16 sps:$4 sm:$0xff]   ;;  %v1334_v3 = vld [vmem:[%s1930_s0] ss:$16 sps:$4 sm:$0xff]   ;;  %v1340_v5 = vld [vmem:[%s1931_s1 + $0x208] ss:$16 sps:$4 sm:$0xff]  }
  0x18   :  { %836 = vmatprep.subr.bf16.mxu0 %v1274_v24  ;;  %922 = vmatprep.subr.bf16.mxu1 %v1276_v25  ;;  %v1337_v4 = vld [vmem:[%s1931_s1 + $0x200] ss:$16 sps:$4 sm:$0xff]   ;;  %v1345_v6 = vld [vmem:[%s1931_s1 + $0x224] ss:$16 sps:$4 sm:$0xff]   ;;  %v1348_v7 = vld [vmem:[%s1931_s1 + $0x22c] ss:$16 sps:$4 sm:$0xff]  }
  0x19   :  { %v1343_v8 = vld [vmem:[%s1931_s1 + $0x220] ss:$16 sps:$4 sm:$0xff]   ;;  %v1346_v9 = vld [vmem:[%s1931_s1 + $0x228] ss:$16 sps:$4 sm:$0xff]   ;;  %v1351_v10 = vld [vmem:[%s1931_s1 + $0x244] ss:$16 sps:$4 sm:$0xff]  }
  0x1a   :  { %v1354_v11 = vld [vmem:[%s1931_s1 + $0x24c] ss:$16 sps:$4 sm:$0xff]   ;;  %v1349_v12 = vld [vmem:[%s1931_s1 + $0x240] ss:$16 sps:$4 sm:$0xff]   ;;  %v1352_v13 = vld [vmem:[%s1931_s1 + $0x248] ss:$16 sps:$4 sm:$0xff]  }
  0x1b   :  { %837 = vmatpush1.bf16.msra.mxu0 %v1278_v26  ;;  %923 = vmatpush1.bf16.msra.mxu1 %v1279_v27  ;;  %v1357_v14 = vld [vmem:[%s1931_s1 + $0x264] ss:$16 sps:$4 sm:$0xff]   ;;  %v1360_v15 = vld [vmem:[%s1931_s1 + $0x26c] ss:$16 sps:$4 sm:$0xff]   ;;  %v1355_v16 = vld [vmem:[%s1931_s1 + $0x260] ss:$16 sps:$4 sm:$0xff]  }
  0x1c   :  { %838 = vmatprep.subr.bf16.mxu0 %v1280_v28  ;;  %924 = vmatprep.subr.bf16.mxu1 %v1282_v29  ;;  %v1358_v17 = vld [vmem:[%s1931_s1 + $0x268] ss:$16 sps:$4 sm:$0xff]   ;;  %v1363_v18 = vld [vmem:[%s1931_s1 + $0x284] ss:$16 sps:$4 sm:$0xff]   ;;  %v1366_v19 = vld [vmem:[%s1931_s1 + $0x28c] ss:$16 sps:$4 sm:$0xff]  }
  0x1d   :  { %v1361_v20 = vld [vmem:[%s1931_s1 + $0x280] ss:$16 sps:$4 sm:$0xff]   ;;  %v1364_v21 = vld [vmem:[%s1931_s1 + $0x288] ss:$16 sps:$4 sm:$0xff]   ;;  %v1369_v22 = vld [vmem:[%s1931_s1 + $0x2a4] ss:$16 sps:$4 sm:$0xff]  }
  0x1e   :  { %v1372_v23 = vld [vmem:[%s1931_s1 + $0x2ac] ss:$16 sps:$4 sm:$0xff]   ;;  %v1367_v24 = vld [vmem:[%s1931_s1 + $0x2a0] ss:$16 sps:$4 sm:$0xff]   ;;  %v1370_v25 = vld [vmem:[%s1931_s1 + $0x2a8] ss:$16 sps:$4 sm:$0xff]  }
  0x1f   :  { %839 = vmatpush1.bf16.msra.mxu0 %v1284_v30  ;;  %925 = vmatpush1.bf16.msra.mxu1 %v1285_v31  ;;  %v1375_v26 = vld [vmem:[%s1931_s1 + $0x2c4] ss:$16 sps:$4 sm:$0xff]   ;;  %v1378_v27 = vld [vmem:[%s1931_s1 + $0x2cc] ss:$16 sps:$4 sm:$0xff]   ;;  %v1373_v29 = vld [vmem:[%s1931_s1 + $0x2c0] ss:$16 sps:$4 sm:$0xff]  }
  0x20   :  { %840 = vmatprep.subr.bf16.mxu0 %v1286_v32  ;;  %926 = vmatprep.subr.bf16.mxu1 %v1288_v33  ;;  %v1435_v28 = vld [vmem:[%s1930_s0 + $0xc] ss:$16 sps:$4 sm:$0xff]   ;;  %v1376_v30 = vld [vmem:[%s1931_s1 + $0x2c8] ss:$16 sps:$4 sm:$0xff]  }
  0x23   :  { %841 = vmatpush1.bf16.msra.mxu0 %v1290_v34  ;;  %927 = vmatpush1.bf16.msra.mxu1 %v1291_v35 }
  0x24   :  { %842 = vmatprep.subr.bf16.mxu0 %v1292_v36  ;;  %928 = vmatprep.subr.bf16.mxu1 %v1294_v37 }
  0x27   :  { %843 = vmatpush1.bf16.msra.mxu0 %v1296_v38  ;;  %929 = vmatpush1.bf16.msra.mxu1 %v1297_v39 }
  0x28   :  { %844 = vmatprep.subr.bf16.mxu0 %v1298_v40  ;;  %930 = vmatprep.subr.bf16.mxu1 %v1300_v41 }
  0x2b   :  { %845 = vmatpush1.bf16.msra.mxu0 %v1302_v42  ;;  %931 = vmatpush1.bf16.msra.mxu1 %v1303_v43 }
  0x2c   :  { %846 = vmatprep.subr.bf16.mxu0 %v1304_v44  ;;  %932 = vmatprep.subr.bf16.mxu1 %v1306_v45 }
  0x2f   :  { %847 = vmatpush1.bf16.msra.mxu0 %v1308_v46  ;;  %933 = vmatpush1.bf16.msra.mxu1 %v1309_v47 }
  0x30   :  { %848 = vmatprep.subr.bf16.mxu0 %v1310_v49  ;;  %934 = vmatprep.subr.bf16.mxu1 %v1312_v50 }
  0x33   :  { %849 = vmatpush1.bf16.msra.mxu0 %v1314_v51  ;;  %935 = vmatpush1.bf16.msra.mxu1 %v1315_v52 }
  0x34   :  { %850 = vmatprep.subr.bf16.mxu0 %v1316_v53  ;;  %936 = vmatprep.subr.bf16.mxu1 %v1318_v54 }
  0x37   :  { %851 = vmatpush1.bf16.msra.mxu0 %v1320_v55  ;;  %937 = vmatpush1.bf16.msra.mxu1 %v1321_v56 }
  0x38   :  { %852 = vmatprep.subr.bf16.mxu0 %v1322_v57  ;;  %938 = vmatprep.subr.bf16.mxu1 %v1324_v58 }
  0x3b   :  { %853 = vmatpush1.bf16.msra.mxu0 %v1326_v59  ;;  %939 = vmatpush1.bf16.msra.mxu1 %v1327_v60 }
  0x3c   :  { %854 = vmatprep.subr.bf16.mxu0 %v1328_v61  ;;  %940 = vmatprep.subr.bf16.mxu1 %v1330_v62 }
  0x3f   :  { %855 = vmatpush1.bf16.msra.mxu0 %v1332_v63  ;;  %941 = vmatpush1.bf16.msra.mxu1 %v1333_v0 }
  0x40   :  { %867 = vmatprep.subr.bf16.mxu0 %v1339_v1  ;;  %953 = vmatprep.subr.bf16.mxu1 %v1342_v2 }
  0x42   :  { %857 = vmatmul.mubr.bf16.vlgmr.msra.gmra.mrb[0].mxu0 %v1334_v3  ;;  %943 = vmatmul.mubr.bf16.vlgmr.msra.gmra.mrb[0].mxu1 %v1334_v3 }
  0x43   :  { %868 = vmatpush1.bf16.msra.mxu0 %v1337_v4  ;;  %954 = vmatpush1.bf16.msra.mxu1 %v1340_v5 }
  0x44   :  { %869 = vmatprep.subr.bf16.mxu0 %v1345_v6  ;;  %955 = vmatprep.subr.bf16.mxu1 %v1348_v7 }
  0x47   :  { %870 = vmatpush1.bf16.msra.mxu0 %v1343_v8  ;;  %956 = vmatpush1.bf16.msra.mxu1 %v1346_v9 }
  0x48   :  { %871 = vmatprep.subr.bf16.mxu0 %v1351_v10  ;;  %957 = vmatprep.subr.bf16.mxu1 %v1354_v11 }
  0x4b   :  { %872 = vmatpush1.bf16.msra.mxu0 %v1349_v12  ;;  %958 = vmatpush1.bf16.msra.mxu1 %v1352_v13 }
  0x4c   :  { %873 = vmatprep.subr.bf16.mxu0 %v1357_v14  ;;  %959 = vmatprep.subr.bf16.mxu1 %v1360_v15 }
  0x4f   :  { %874 = vmatpush1.bf16.msra.mxu0 %v1355_v16  ;;  %960 = vmatpush1.bf16.msra.mxu1 %v1358_v17 }
  0x50   :  { %875 = vmatprep.subr.bf16.mxu0 %v1363_v18  ;;  %961 = vmatprep.subr.bf16.mxu1 %v1366_v19 }
  0x53   :  { %876 = vmatpush1.bf16.msra.mxu0 %v1361_v20  ;;  %962 = vmatpush1.bf16.msra.mxu1 %v1364_v21 }
  0x54   :  { %877 = vmatprep.subr.bf16.mxu0 %v1369_v22  ;;  %963 = vmatprep.subr.bf16.mxu1 %v1372_v23 }
  0x57   :  { %878 = vmatpush1.bf16.msra.mxu0 %v1367_v24  ;;  %964 = vmatpush1.bf16.msra.mxu1 %v1370_v25 }
  0x58   :  { %7 = vsyncpa [#allocation4], 0  ;;  %879 = vmatprep.subr.bf16.mxu0 %v1375_v26  ;;  %965 = vmatprep.subr.bf16.mxu1 %v1378_v27  ;;  %v1381_v31 = vld [vmem:[%s1931_s1 + $0x2e4] ss:$16 sps:$4 sm:$0xff]   ;;  %v1384_v32 = vld [vmem:[%s1931_s1 + $0x2ec] ss:$16 sps:$4 sm:$0xff]  }
  0x59   :  { %899 = vmatprep.mubr.bf16.mxu0 %v1435_v28  ;;  %985 = vmatprep.mubr.bf16.mxu1 %v1435_v28  ;;  %v1379_v33 = vld [vmem:[%s1931_s1 + $0x2e0] ss:$16 sps:$4 sm:$0xff]   ;;  %v1382_v34 = vld [vmem:[%s1931_s1 + $0x2e8] ss:$16 sps:$4 sm:$0xff]   ;;  %v1387_v35 = vld [vmem:[%s1931_s1 + $0x304] ss:$16 sps:$4 sm:$0xff]  }
  0x5a   :  { %v1390_v36 = vld [vmem:[%s1931_s1 + $0x30c] ss:$16 sps:$4 sm:$0xff]   ;;  %v1385_v37 = vld [vmem:[%s1931_s1 + $0x300] ss:$16 sps:$4 sm:$0xff]   ;;  %v1388_v38 = vld [vmem:[%s1931_s1 + $0x308] ss:$16 sps:$4 sm:$0xff]  }
  0x5b   :  { %880 = vmatpush1.bf16.msra.mxu0 %v1373_v29  ;;  %966 = vmatpush1.bf16.msra.mxu1 %v1376_v30  ;;  %v1393_v39 = vld [vmem:[%s1931_s1 + $0x324] ss:$16 sps:$4 sm:$0xff]   ;;  %v1396_v40 = vld [vmem:[%s1931_s1 + $0x32c] ss:$16 sps:$4 sm:$0xff]   ;;  %v1391_v41 = vld [vmem:[%s1931_s1 + $0x320] ss:$16 sps:$4 sm:$0xff]  }
  0x5c   :  { %881 = vmatprep.subr.bf16.mxu0 %v1381_v31  ;;  %967 = vmatprep.subr.bf16.mxu1 %v1384_v32  ;;  %v1394_v42 = vld [vmem:[%s1931_s1 + $0x328] ss:$16 sps:$4 sm:$0xff]   ;;  %v1399_v43 = vld [vmem:[%s1931_s1 + $0x344] ss:$16 sps:$4 sm:$0xff]   ;;  %v1402_v44 = vld [vmem:[%s1931_s1 + $0x34c] ss:$16 sps:$4 sm:$0xff]  }
  0x5d   :  { %v1397_v45 = vld [vmem:[%s1931_s1 + $0x340] ss:$16 sps:$4 sm:$0xff]   ;;  %v1400_v46 = vld [vmem:[%s1931_s1 + $0x348] ss:$16 sps:$4 sm:$0xff]   ;;  %v1405_v47 = vld [vmem:[%s1931_s1 + $0x364] ss:$16 sps:$4 sm:$0xff]  }
  0x5e   :  { %v1408_v48 = vld [vmem:[%s1931_s1 + $0x36c] ss:$16 sps:$4 sm:$0xff]   ;;  %v1403_v49 = vld [vmem:[%s1931_s1 + $0x360] ss:$16 sps:$4 sm:$0xff]   ;;  %v1406_v50 = vld [vmem:[%s1931_s1 + $0x368] ss:$16 sps:$4 sm:$0xff]  }
  0x5f   :  { %882 = vmatpush1.bf16.msra.mxu0 %v1379_v33  ;;  %968 = vmatpush1.bf16.msra.mxu1 %v1382_v34  ;;  %v1411_v51 = vld [vmem:[%s1931_s1 + $0x384] ss:$16 sps:$4 sm:$0xff]   ;;  %v1414_v52 = vld [vmem:[%s1931_s1 + $0x38c] ss:$16 sps:$4 sm:$0xff]   ;;  %v1409_v53 = vld [vmem:[%s1931_s1 + $0x380] ss:$16 sps:$4 sm:$0xff]  }
  0x60   :  { %883 = vmatprep.subr.bf16.mxu0 %v1387_v35  ;;  %969 = vmatprep.subr.bf16.mxu1 %v1390_v36  ;;  %v1412_v54 = vld [vmem:[%s1931_s1 + $0x388] ss:$16 sps:$4 sm:$0xff]   ;;  %v1417_v55 = vld [vmem:[%s1931_s1 + $0x3a4] ss:$16 sps:$4 sm:$0xff]   ;;  %v1420_v56 = vld [vmem:[%s1931_s1 + $0x3ac] ss:$16 sps:$4 sm:$0xff]  }
  0x61   :  { %v1415_v57 = vld [vmem:[%s1931_s1 + $0x3a0] ss:$16 sps:$4 sm:$0xff]   ;;  %v1418_v58 = vld [vmem:[%s1931_s1 + $0x3a8] ss:$16 sps:$4 sm:$0xff]   ;;  %v1423_v59 = vld [vmem:[%s1931_s1 + $0x3c4] ss:$16 sps:$4 sm:$0xff]  }
  0x62   :  { %v1426_v60 = vld [vmem:[%s1931_s1 + $0x3cc] ss:$16 sps:$4 sm:$0xff]   ;;  %v1421_v61 = vld [vmem:[%s1931_s1 + $0x3c0] ss:$16 sps:$4 sm:$0xff]   ;;  %v1424_v62 = vld [vmem:[%s1931_s1 + $0x3c8] ss:$16 sps:$4 sm:$0xff]  }
  0x63   :  { %884 = vmatpush1.bf16.msra.mxu0 %v1385_v37  ;;  %970 = vmatpush1.bf16.msra.mxu1 %v1388_v38  ;;  %v1429_v63 = vld [vmem:[%s1931_s1 + $0x3e4] ss:$16 sps:$4 sm:$0xff]   ;;  %v1432_v0 = vld [vmem:[%s1931_s1 + $0x3ec] ss:$16 sps:$4 sm:$0xff]   ;;  %v1427_v1 = vld [vmem:[%s1931_s1 + $0x3e0] ss:$16 sps:$4 sm:$0xff]  }
  0x64   :  { %885 = vmatprep.subr.bf16.mxu0 %v1393_v39  ;;  %971 = vmatprep.subr.bf16.mxu1 %v1396_v40  ;;  %v1430_v2 = vld [vmem:[%s1931_s1 + $0x3e8] ss:$16 sps:$4 sm:$0xff]  }
  0x65   :  { %v1433_v3 = vld [vmem:[%s1930_s0 + $0x8] ss:$16 sps:$4 sm:$0xff]   ;;  %s1492_s0 = smov [#allocation3]  }
  0x66   :  { %s1084_s1 = sshll.u32 %s1492_s0, 4  ;;  %s1085_s1 = int_to_ptr.vmem [resolvable:$true] %s1084_s1 }
  0x67   :  { %886 = vmatpush1.bf16.msra.mxu0 %v1391_v41  ;;  %972 = vmatpush1.bf16.msra.mxu1 %v1394_v42  ;;  %s1468_s21 = scalar_lea.vmem %s1085_s1, 1024  ;;  %p1473_p1 = scmp.lt.s32.totalorder %s1085_s1, %s1085_s1 }
  0x68   :  { %887 = vmatprep.subr.bf16.mxu0 %v1399_v43  ;;  %973 = vmatprep.subr.bf16.mxu1 %v1402_v44  ;;  %p1469_p0 = scmp.ne.s32.totalorder %s1085_s1, %s1468_s21  ;;  %p1474_p2 = scmp.lt.s32.totalorder %s1468_s21, %s1468_s21 }
  0x6a   :  { %p1475_p3 = por %p1474_p2, %p1473_p1 }
  0x6b   :  { %888 = vmatpush1.bf16.msra.mxu0 %v1397_v45  ;;  %974 = vmatpush1.bf16.msra.mxu1 %v1400_v46 }
  0x6c   :  { %889 = vmatprep.subr.bf16.mxu0 %v1405_v47  ;;  %975 = vmatprep.subr.bf16.mxu1 %v1408_v48  ;;  %p1476_p4 = pnand %p1475_p3, %p1469_p0 }
  0x6f   :  { %890 = vmatpush1.bf16.msra.mxu0 %v1403_v49  ;;  %976 = vmatpush1.bf16.msra.mxu1 %v1406_v50 }
  0x70   :  { %891 = vmatprep.subr.bf16.mxu0 %v1411_v51  ;;  %977 = vmatprep.subr.bf16.mxu1 %v1414_v52 }
  0x73   :  { %892 = vmatpush1.bf16.msra.mxu0 %v1409_v53  ;;  %978 = vmatpush1.bf16.msra.mxu1 %v1412_v54 }
  0x74   :  { %893 = vmatprep.subr.bf16.mxu0 %v1417_v55  ;;  %979 = vmatprep.subr.bf16.mxu1 %v1420_v56 }
  0x77   :  { %894 = vmatpush1.bf16.msra.mxu0 %v1415_v57  ;;  %980 = vmatpush1.bf16.msra.mxu1 %v1418_v58 }
  0x78   :  { %895 = vmatprep.subr.bf16.mxu0 %v1423_v59  ;;  %981 = vmatprep.subr.bf16.mxu1 %v1426_v60 }
  0x7b   :  { %896 = vmatpush1.bf16.msra.mxu0 %v1421_v61  ;;  %982 = vmatpush1.bf16.msra.mxu1 %v1424_v62 }
  0x7c   :  { %897 = vmatprep.subr.bf16.mxu0 %v1429_v63  ;;  %983 = vmatprep.subr.bf16.mxu1 %v1432_v0 }
  0x7f   :  { %898 = vmatpush1.bf16.msra.mxu0 %v1427_v1  ;;  %984 = vmatpush1.bf16.msra.mxu1 %v1430_v2 }
  0x82   :  { %900 = vmatmul.mubr.bf16.vlgmr.msra.gmra.mrb[0].mxu0 %v1433_v3  ;;  %986 = vmatmul.mubr.bf16.vlgmr.msra.gmra.mrb[0].mxu1 %v1433_v3 }
 0x155   :  { %v901_v4 = vpop.f32.mrb[0].mxu0  ;;  %v987_v5 = vpop.f32.mrb[0].mxu1 }
 0x156   :  { %v1023_v6 = vsub.f32 0.0, %v901_v4  ;;  %v1025_v7 = vsub.f32 0.0, %v987_v5  ;;  %v903_v8 = vpop.f32.mrb[1].mxu0  ;;  %v989_v9 = vpop.f32.mrb[1].mxu1 }
 0x157   :  { %v1024_v10 = vsub.f32 0.0, %v903_v8  ;;  %v1026_v11 = vsub.f32 0.0, %v989_v9  ;;  %v1906_v12 = vpop.f32.mrb[2].mxu0  ;;  %v1908_v13 = vpop.f32.mrb[2].mxu1 }
 0x158   :  { %v1031_v14 = vmul.f32 1.442695, %v1023_v6  ;;  %v1035_v15 = vmul.f32 1.442695, %v1025_v7  ;;  %v1027_v16 = vsub.f32 0.0, %v1906_v12  ;;  %v1029_v17 = vsub.f32 0.0, %v1908_v13 }
 0x159   :  { %v1033_v18 = vmul.f32 1.442695, %v1024_v10  ;;  %v1037_v19 = vmul.f32 1.442695, %v1026_v11  ;;  %v907_v20 = vpop.f32.mrb[3].mxu0  ;;  %v1912_v21 = vpop.f32.mrb[3].mxu1 }
 0x15a   :  { %1436 = vpow2.f32 %v1031_v14  ;;  %v1039_v22 = vmul.f32 1.442695, %v1027_v16  ;;  %v1028_v23 = vsub.f32 0.0, %v907_v20  ;;  %v1043_v24 = vmul.f32 1.442695, %v1029_v17 }
 0x15b   :  { %1438 = vpow2.f32 %v1035_v15  ;;  %v1030_v25 = vsub.f32 0.0, %v1912_v21 }
 0x15c   :  { %1440 = vpow2.f32 %v1033_v18  ;;  %v1041_v26 = vmul.f32 1.442695, %v1028_v23 }
 0x15d   :  { %1442 = vpow2.f32 %v1037_v19  ;;  %v1045_v27 = vmul.f32 1.442695, %v1030_v25 }
 0x15e   :  { %1444 = vpow2.f32 %v1039_v22 }
 0x15f   :  { %1446 = vpow2.f32 %v1043_v24 }
 0x160   :  { %1448 = vpow2.f32 %v1041_v26 }
 0x161   :  { %1450 = vpow2.f32 %v1045_v27 }
 0x164   :  { %v1437_v28 = vpop.eup %1436 }
 0x165   :  { %v1439_v29 = vpop.eup %1438  ;;  %v1047_v30 = vadd.f32 1.0, %v1437_v28 }
 0x166   :  { %v1441_v31 = vpop.eup %1440  ;;  %v1049_v32 = vadd.f32 1.0, %v1439_v29 }
 0x167   :  { %v1443_v33 = vpop.eup %1442  ;;  %1452 = vrcp.f32 %v1047_v30  ;;  %v1048_v34 = vadd.f32 1.0, %v1441_v31 }
 0x168   :  { %v1445_v35 = vpop.eup %1444  ;;  %1454 = vrcp.f32 %v1049_v32  ;;  %v1050_v36 = vadd.f32 1.0, %v1443_v33 }
 0x169   :  { %v1447_v37 = vpop.eup %1446  ;;  %1456 = vrcp.f32 %v1048_v34  ;;  %v1051_v38 = vadd.f32 1.0, %v1445_v35 }
 0x16a   :  { %v1449_v39 = vpop.eup %1448  ;;  %1458 = vrcp.f32 %v1050_v36  ;;  %v1053_v40 = vadd.f32 1.0, %v1447_v37 }
 0x16b   :  { %v1451_v41 = vpop.eup %1450  ;;  %1460 = vrcp.f32 %v1051_v38  ;;  %v1052_v42 = vadd.f32 1.0, %v1449_v39 }
 0x16c   :  { %1462 = vrcp.f32 %v1053_v40  ;;  %v1054_v43 = vadd.f32 1.0, %v1451_v41 }
 0x16d   :  { %1464 = vrcp.f32 %v1052_v42 }
 0x16e   :  { %1466 = vrcp.f32 %v1054_v43 }
 0x171   :  { %v1453_v44 = vpop.eup %1452 }
 0x172   :  { %v1455_v45 = vpop.eup %1454  ;;  %v1063_v46 = vmul.f32 %v1453_v44, %v901_v4 }
 0x173   :  { %v1457_v47 = vpop.eup %1456  ;;  %v1065_v48 = vmul.f32 %v1455_v45, %v987_v5 }
 0x174   :  { %v1459_v49 = vpop.eup %1458  ;;  %1071 = vst [vmem:[#allocation3] sm:$0xff] %v1063_v46  ;;  %v1064_v50 = vmul.f32 %v1457_v47, %v903_v8 }
 0x175   :  { %v1461_v51 = vpop.eup %1460  ;;  %1073 = vst [vmem:[#allocation3 + $0x10] sm:$0xff] %v1065_v48  ;;  %v1066_v52 = vmul.f32 %v1459_v49, %v989_v9 }
 0x176   :  { %v1463_v53 = vpop.eup %1462  ;;  %1072 = vst [vmem:[#allocation3 + $0x8] sm:$0xff] %v1064_v50  ;;  %v1067_v54 = vmul.f32 %v1461_v51, %v1906_v12 }
 0x177   :  { %v1465_v55 = vpop.eup %1464  ;;  %1074 = vst [vmem:[#allocation3 + $0x18] sm:$0xff] %v1066_v52  ;;  %v1069_v56 = vmul.f32 %v1463_v53, %v1908_v13 }
 0x178   :  { %v1467_v57 = vpop.eup %1466  ;;  %1075 = vst [vmem:[#allocation3 + $0x20] sm:$0xff] %v1067_v54  ;;  %v1068_v58 = vmul.f32 %v1465_v55, %v907_v20 }
 0x179   :  { %1077 = vst [vmem:[#allocation3 + $0x30] sm:$0xff] %v1069_v56  ;;  %v1070_v59 = vmul.f32 %v1467_v57, %v1912_v21 }
 0x17a   :  { %1076 = vst [vmem:[#allocation3 + $0x28] sm:$0xff] %v1068_v58 }
 0x17b   :  { %1078 = vst [vmem:[#allocation3 + $0x38] sm:$0xff] %v1070_v59 }
 0x17c   :  { %1479 = shalt.err (!%p1476_p4)
}
 0x17d   :  { %s1480_s24 = scalar_lea.hbm %s1932_s2, 1024 }
 0x17e   :  { %p1481_p5 = scmp.ne.s32.totalorder %s1932_s2, %s1480_s24  ;;  %p1484_p6 = scmp.lt.u32.totalorder %s1480_s24, %s1932_s2 }
 0x180   :  { %p1486_p7 = pnand %p1484_p6, %p1481_p5 }
 0x182   :  { %1489 = shalt.err (!%p1486_p7)
}
 0x183   :  { %s1493_s29 = smov 512   ;;  %s1494_s30 = smov 32  }
 0x184   :  { %1090 = dma.vmem_to_hbm [thread:$0]  %s1085_s1, 1024, %s1932_s2, [#allocation4], %s1493_s29, %s1493_s29, %s1494_s30  }
 0x185   :  { %1490 = dma.done.wait [#allocation4], 1024  }
 0x186   :  { %1491 = vsyncadd [#allocation4], 4294966272 }
 0x187   :  { %1094 = vsyncpa [#allocation4], 1 }

</bundles_post_ra>
